<compile_context>
chip_gen: v7x
topology: tpu7x:2x2x1
jax: 0.10.0
libtpu: 0.0.40
codegen_flags: <defaults>
</compile_context>

<pallas_src>
import functools

import jax
import jax.numpy as jnp
from jax.experimental import pallas as pl
from jax.experimental.pallas import tpu as pltpu


# ----------------------------------------------------------------------------
# Kernel: one group of whole images (packed on the lane axis) per grid step.
# ----------------------------------------------------------------------------
def _rcu_kernel(hidx_ref, widx_ref, x_ref, w1_ref, b1_ref, w2_ref, b2_ref,
                o_ref, *, H, W, mm_dtype):
    """Refs:
      hidx_ref/widx_ref : (1, L) int32   per-lane row / col index within its image
      x_ref             : (C, L)         packed input block (channels on sublanes)
      w1_ref, w2_ref    : (3, C, 3*C)    dx-fused weights: [dy, Cout, dx*C + Cin]
      b1_ref, b2_ref    : (C, 1) f32
      o_ref             : (C, L)
    """
    _, L = o_ref.shape

    # Per-lane image-edge validity (shared by both convs).  Tap (dy, dx) reads
    # the source pixel at (h + dy - 1, w + dx - 1); only edge taps need masks.
    h_idx = hidx_ref[...]
    w_idx = widx_ref[...]
    h_ok = (h_idx >= 1, None, h_idx <= H - 2)   # dy = 0, 1, 2
    w_ok = (w_idx >= 1, None, w_idx <= W - 2)   # dx = 0, 1, 2

    def tap_mask(dy, dx):
        m = None
        for p in (h_ok[dy], w_ok[dx]):
            if p is not None:
                m = p if m is None else (m & p)
        return m

    masks = [[tap_mask(dy, dx) for dx in range(3)] for dy in range(3)]

    def stacked_patch(a, dy):
        # (3*C, L) im2col slab for one kernel row: rows [dx*C:(dx+1)*C] hold the
        # lane-rolled (XLU) + edge-masked copy of `a` for tap (dy, dx).  Every
        # roll wrap (incl. across packed image boundaries) is an image-edge tap
        # and is zeroed by the mask, matching SAME zero padding.
        parts = []
        for dx in range(3):
            s = (dy - 1) * W + (dx - 1)          # flattened source offset
            p = a if s == 0 else pltpu.roll(a, shift=(-s) % L, axis=1)
            m = masks[dy][dx]
            if m is not None:
                p = jnp.where(m, p, 0)
            parts.append(p)
        return jnp.concatenate(parts, axis=0)    # sublane concat (tile-aligned)

    def conv3x3(a, w_ref, b_ref):
        # `a` is already ReLU'd and cast to mm_dtype (cast hoisted out of taps).
        # One (C,3C)@(3C,L) MXU matmul per kernel row -> 3 dots/conv, K = 3C.
        # Adds are kept directly between dots (MRB-friendly accumulation on v7x).
        acc = jnp.dot(w_ref[0], stacked_patch(a, 0),
                      preferred_element_type=jnp.float32)
        acc = acc + jnp.dot(w_ref[1], stacked_patch(a, 1),
                            preferred_element_type=jnp.float32)
        acc = acc + jnp.dot(w_ref[2], stacked_patch(a, 2),
                            preferred_element_type=jnp.float32)
        return acc + b_ref[...]                  # (C,1) bias broadcasts over lanes

    a1 = jnp.maximum(x_ref[...], 0.0).astype(mm_dtype)
    out1 = conv3x3(a1, w1_ref, b1_ref)
    a2 = jnp.maximum(out1, 0.0).astype(mm_dtype)
    out2 = conv3x3(a2, w2_ref, b2_ref)
    # Residual re-reads the input block; no f32 copy of x kept live across convs.
    o_ref[...] = (out2 + x_ref[...]).astype(o_ref.dtype)


# ----------------------------------------------------------------------------
# Blocking / VMEM planning
# ----------------------------------------------------------------------------
def _plan_blocks(B, Cp, N, in_itemsize, mm_itemsize, act_budget_bytes=20 * 2**20):
    """Pick how many whole images share the lane axis per grid step + VMEM limit."""
    # Rough per-image bytes resident per grid step: in + out blocks
    # (double-buffered by the pipeline), the cast activation, one (3C, L)
    # stacked patch, the conv1 output and the f32 accumulator.
    per_img = Cp * N * (2 * 2 * in_itemsize + 2 * mm_itemsize
                        + 3 * mm_itemsize + 2 * 4)
    if N % 128 != 0:
        # Lane blocks must be 128-aligned or full-width; fall back to one block.
        # TODO(synk): pad the lane axis / spatial-tile instead at large sizes.
        bblk = B
    else:
        bblk = 1
        for d in range(B, 0, -1):
            if B % d == 0 and d * per_img <= act_budget_bytes:
                bblk = d
                break
    fixed = 2 * 2 * (9 * Cp * Cp) * mm_itemsize + 4 * Cp * 4  # weights (x2 bufs) + biases
    est = fixed + bblk * per_img
    # Explicit scoped-VMEM budget: >= 32 MiB (safe on all gens), <= 48 MiB
    # (stays well inside v7x's 64 MiB physical VMEM).
    vmem_limit = int(min(48 * 2**20, max(32 * 2**20, 2 * est)))
    return bblk, vmem_limit


# ----------------------------------------------------------------------------
# Wrapper
# ----------------------------------------------------------------------------
def residual_conv_unit(x_nchw, w1_oihw, b1, w2_oihw, b2):
    """x_nchw: (B, C, H, W); weights in PyTorch OIHW layout. Returns (B, C, H, W)."""
    B, C, H, W = x_nchw.shape
    N = H * W

    # bf16 MXU operands (f32 accumulation) only once the contraction is large
    # enough to pay; small C stays f32 (exact, and the MXU is idle there anyway).
    mm_dtype = jnp.bfloat16 if C >= 128 else jnp.float32
    mm_itemsize = jnp.dtype(mm_dtype).itemsize
    in_itemsize = jnp.dtype(x_nchw.dtype).itemsize

    # Zero-pad channels to a sublane-tile multiple (8 for f32, 16 for bf16) so
    # the sublane concat and all blocks are tile-aligned.  Padded channels are
    # exact zeros through both convs and the residual, and get sliced off.
    ctile = 16 if mm_dtype == jnp.bfloat16 else 8
    Cp = max(ctile, -(-C // ctile) * ctile)
    cpad = Cp - C

    bblk, vmem_limit = _plan_blocks(B, Cp, N, in_itemsize, mm_itemsize)
    Lblk = bblk * N
    grid = (B // bblk,)

    # Pack: (B, C, H, W) -> (Cp, B*N): channels on sublanes, batch+spatial on lanes.
    xp = x_nchw.reshape(B, C, N)
    if cpad:
        xp = jnp.pad(xp, ((0, 0), (0, cpad), (0, 0)))
    x_packed = jnp.transpose(xp, (1, 0, 2)).reshape(Cp, B * N)

    def fuse_weights(w_oihw):
        w = w_oihw
        if cpad:
            w = jnp.pad(w, ((0, cpad), (0, cpad), (0, 0), (0, 0)))
        # (O, I, kh, kw) -> (kh, O, kw*I): row dy contracts against the
        # stacked patch whose sublane block dx holds the (dy, dx) tap.
        return jnp.transpose(w, (2, 0, 3, 1)).reshape(3, Cp, 3 * Cp).astype(mm_dtype)

    def prep_bias(b):
        bb = jnp.pad(b, (0, cpad)) if cpad else b
        return bb.reshape(Cp, 1).astype(jnp.float32)

    w1f, w2f = fuse_weights(w1_oihw), fuse_weights(w2_oihw)
    b1c, b2c = prep_bias(b1), prep_bias(b2)

    # Per-lane spatial indices (identical for every image / every lane block;
    # precomputed to avoid in-kernel integer div/mod).
    r = jnp.arange(N, dtype=jnp.int32)
    h_idx = jnp.tile(r // W, bblk).reshape(1, Lblk)
    w_idx = jnp.tile(r % W, bblk).reshape(1, Lblk)

    kernel = functools.partial(_rcu_kernel, H=H, W=W, mm_dtype=mm_dtype)

    out_packed = pl.pallas_call(
        kernel,
        out_shape=jax.ShapeDtypeStruct((Cp, B * N), x_nchw.dtype),
        grid_spec=pltpu.PrefetchScalarGridSpec(
            num_scalar_prefetch=0,
            grid=grid,
            in_specs=[
                pl.BlockSpec((1, Lblk), lambda i: (0, 0)),            # h_idx
                pl.BlockSpec((1, Lblk), lambda i: (0, 0)),            # w_idx
                pl.BlockSpec((Cp, Lblk), lambda i: (0, i)),           # x (packed)
                pl.BlockSpec((3, Cp, 3 * Cp), lambda i: (0, 0, 0)),   # conv1 weights
                pl.BlockSpec((Cp, 1), lambda i: (0, 0)),              # conv1 bias
                pl.BlockSpec((3, Cp, 3 * Cp), lambda i: (0, 0, 0)),   # conv2 weights
                pl.BlockSpec((Cp, 1), lambda i: (0, 0)),              # conv2 bias
            ],
            out_specs=pl.BlockSpec((Cp, Lblk), lambda i: (0, i)),
        ),
        compiler_params=pltpu.CompilerParams(
            dimension_semantics=("parallel",),
            vmem_limit_bytes=vmem_limit),
    )(h_idx, w_idx, x_packed, w1f, b1c, w2f, b2c)

    out = jnp.transpose(out_packed.reshape(Cp, B, N), (1, 0, 2)).reshape(B, Cp, H, W)
    return out[:, :C] if cpad else out


# ----------------------------------------------------------------------------
# Pure-JAX reference matching PyTorch nn.Conv2d semantics (NCHW/OIHW).
# ----------------------------------------------------------------------------
def _reference(x, w1, b1, w2, b2):
    def conv(y, w, b):
        out = jax.lax.conv_general_dilated(
            y, w, window_strides=(1, 1), padding="SAME",
            dimension_numbers=("NCHW", "OIHW", "NCHW"))
        return out + b[None, :, None, None]

    out = jnp.maximum(x, 0.0)
    out = conv(out, w1, b1)
    out = jnp.maximum(out, 0.0)
    out = conv(out, w2, b2)
    return out + x


if __name__ == "__main__":
    def run_case(B, C, H, W, atol, rtol, round_to_bf16):
        key = jax.random.PRNGKey(0)
        kx, kw1, kb1, kw2, kb2 = jax.random.split(key, 5)
        x = jax.random.normal(kx, (B, C, H, W), dtype=jnp.float32)
        # shapes as in nn.Conv2d(features, features, kernel_size=3, padding=1)
        w1 = jax.random.normal(kw1, (C, C, 3, 3), dtype=jnp.float32) * 0.1
        b1 = jax.random.normal(kb1, (C,), dtype=jnp.float32) * 0.1
        w2 = jax.random.normal(kw2, (C, C, 3, 3), dtype=jnp.float32) * 0.1
        b2 = jax.random.normal(kb2, (C,), dtype=jnp.float32) * 0.1
        if round_to_bf16:
            # Make inputs bf16-representable so the f32 reference only differs
            # from the bf16 MXU path by activation-rounding noise.
            cast = lambda t: t.astype(jnp.bfloat16).astype(jnp.float32)
            x, w1, b1, w2, b2 = (cast(t) for t in (x, w1, b1, w2, b2))

        out = jax.block_until_ready(residual_conv_unit(x, w1, b1, w2, b2))
        ref = jax.block_until_ready(_reference(x, w1, b1, w2, b2))

        assert out.shape == (B, C, H, W)
        assert bool(jnp.isfinite(out).all())
        assert jnp.allclose(out, ref, atol=atol, rtol=rtol), (
            f"mismatch vs reference at {(B, C, H, W)}: "
            f"max abs err {float(jnp.max(jnp.abs(out - ref)))}")

    # Small f32 case (the module's nominal test size): exact check of the
    # lane-packed layout, roll taps, edge masks and residual.
    run_case(2, 4, 16, 16, atol=1e-4, rtol=1e-4, round_to_bf16=False)
    # C >= 128 exercises the bf16, fused-K=3C MXU path (looser tolerance).
    run_case(2, 128, 8, 8, atol=2e-1, rtol=5e-2, round_to_bf16=True)

    print("KERNEL_OK")
</pallas_src>

<mosaic_0001>
module attributes {stable_mosaic.version = 11 : i64} {
  func.func @_rcu_kernel(%arg0: i32, %arg1: memref<1x512xi32, #tpu.memory_space<vmem>>, %arg2: memref<1x512xi32, #tpu.memory_space<vmem>>, %arg3: memref<8x512xf32, #tpu.memory_space<vmem>>, %arg4: memref<3x8x24xf32, #tpu.memory_space<vmem>>, %arg5: memref<8x1xf32, #tpu.memory_space<vmem>>, %arg6: memref<3x8x24xf32, #tpu.memory_space<vmem>>, %arg7: memref<8x1xf32, #tpu.memory_space<vmem>>, %arg8: memref<8x512xf32, #tpu.memory_space<vmem>>) attributes {dimension_semantics = [#tpu.dimension_semantics<parallel>], iteration_bounds = array<i64: 1>, scalar_prefetch = 0 : i64, scratch_operands = 0 : i64, tpu.core_type = #tpu.core_type<tc>, window_params = [{pipeline_mode = #tpu.pipeline_mode<synchronous>, transform_indices = @transform_0, window_bounds = array<i64: 1, 512>}, {pipeline_mode = #tpu.pipeline_mode<synchronous>, transform_indices = @transform_1, window_bounds = array<i64: 1, 512>}, {transform_indices = @transform_2, window_bounds = array<i64: 8, 512>}, {pipeline_mode = #tpu.pipeline_mode<synchronous>, transform_indices = @transform_3, window_bounds = array<i64: 3, 8, 24>}, {pipeline_mode = #tpu.pipeline_mode<synchronous>, transform_indices = @transform_4, window_bounds = array<i64: 8, 1>}, {pipeline_mode = #tpu.pipeline_mode<synchronous>, transform_indices = @transform_5, window_bounds = array<i64: 3, 8, 24>}, {pipeline_mode = #tpu.pipeline_mode<synchronous>, transform_indices = @transform_6, window_bounds = array<i64: 8, 1>}, {transform_indices = @transform_7, window_bounds = array<i64: 8, 512>}]} {
    %c0 = arith.constant 0 : index
    %c0_0 = arith.constant 0 : index
    %0 = vector.load %arg1[%c0, %c0_0] : memref<1x512xi32, #tpu.memory_space<vmem>>, vector<1x512xi32>
    %c0_1 = arith.constant 0 : index
    %c0_2 = arith.constant 0 : index
    %1 = vector.load %arg2[%c0_1, %c0_2] : memref<1x512xi32, #tpu.memory_space<vmem>>, vector<1x512xi32>
    %c1_i32 = arith.constant 1 : i32
    %2 = vector.broadcast %c1_i32 : i32 to vector<1x512xi32>
    %3 = arith.cmpi sge, %0, %2 : vector<1x512xi32>
    %c14_i32 = arith.constant 14 : i32
    %4 = vector.broadcast %c14_i32 : i32 to vector<1x512xi32>
    %5 = arith.cmpi sle, %0, %4 : vector<1x512xi32>
    %c1_i32_3 = arith.constant 1 : i32
    %6 = vector.broadcast %c1_i32_3 : i32 to vector<1x512xi32>
    %7 = arith.cmpi sge, %1, %6 : vector<1x512xi32>
    %c14_i32_4 = arith.constant 14 : i32
    %8 = vector.broadcast %c14_i32_4 : i32 to vector<1x512xi32>
    %9 = arith.cmpi sle, %1, %8 : vector<1x512xi32>
    %10 = arith.andi %3, %7 : vector<1x512xi1>
    %11 = arith.andi %3, %9 : vector<1x512xi1>
    %12 = arith.andi %5, %7 : vector<1x512xi1>
    %13 = arith.andi %5, %9 : vector<1x512xi1>
    %c0_5 = arith.constant 0 : index
    %c0_6 = arith.constant 0 : index
    %14 = vector.load %arg3[%c0_5, %c0_6] : memref<8x512xf32, #tpu.memory_space<vmem>>, vector<8x512xf32>
    %cst = arith.constant 0.000000e+00 : f32
    %15 = vector.broadcast %cst : f32 to vector<8x512xf32>
    %16 = arith.maximumf %14, %15 : vector<8x512xf32>
    %c0_7 = arith.constant 0 : index
    %c0_8 = arith.constant 0 : index
    %c0_9 = arith.constant 0 : index
    %17 = vector.load %arg4[%c0_7, %c0_8, %c0_9] : memref<3x8x24xf32, #tpu.memory_space<vmem>>, vector<1x8x24xf32>
    %18 = vector.shape_cast %17 : vector<1x8x24xf32> to vector<8x24xf32>
    %c17_i32 = arith.constant 17 : i32
    %19 = tpu.dynamic_rotate %16 by %c17_i32 dim 1 : vector<8x512xf32>, i32 -> vector<8x512xf32>
    %c0_i32 = arith.constant 0 : i32
    %20 = arith.sitofp %c0_i32 : i32 to f32
    %21 = vector.shape_cast %10 : vector<1x512xi1> to vector<1x512xi1>
    %22 = vector.broadcast %21 : vector<1x512xi1> to vector<8x512xi1>
    %23 = vector.broadcast %20 : f32 to vector<8x512xf32>
    %24 = arith.select %22, %19, %23 : vector<8x512xi1>, vector<8x512xf32>
    %c16_i32 = arith.constant 16 : i32
    %25 = tpu.dynamic_rotate %16 by %c16_i32 dim 1 : vector<8x512xf32>, i32 -> vector<8x512xf32>
    %c0_i32_10 = arith.constant 0 : i32
    %26 = arith.sitofp %c0_i32_10 : i32 to f32
    %27 = vector.shape_cast %3 : vector<1x512xi1> to vector<1x512xi1>
    %28 = vector.broadcast %27 : vector<1x512xi1> to vector<8x512xi1>
    %29 = vector.broadcast %26 : f32 to vector<8x512xf32>
    %30 = arith.select %28, %25, %29 : vector<8x512xi1>, vector<8x512xf32>
    %c15_i32 = arith.constant 15 : i32
    %31 = tpu.dynamic_rotate %16 by %c15_i32 dim 1 : vector<8x512xf32>, i32 -> vector<8x512xf32>
    %c0_i32_11 = arith.constant 0 : i32
    %32 = arith.sitofp %c0_i32_11 : i32 to f32
    %33 = vector.shape_cast %11 : vector<1x512xi1> to vector<1x512xi1>
    %34 = vector.broadcast %33 : vector<1x512xi1> to vector<8x512xi1>
    %35 = vector.broadcast %32 : f32 to vector<8x512xf32>
    %36 = arith.select %34, %31, %35 : vector<8x512xi1>, vector<8x512xf32>
    %37 = tpu.concatenate %24, %30, %36 in 0 : vector<8x512xf32>, vector<8x512xf32>, vector<8x512xf32> -> vector<24x512xf32>
    %cst_12 = arith.constant dense<0.000000e+00> : vector<8x512xf32>
    %38 = tpu.matmul %18, %37, %cst_12 {dimension_numbers = #tpu.dot_dimension_numbers<[1], [0], [0], [1], [0, 0, 1, 1], [], []>} : vector<8x24xf32>, vector<24x512xf32>, vector<8x512xf32> -> vector<8x512xf32>
    %c1 = arith.constant 1 : index
    %c0_13 = arith.constant 0 : index
    %c0_14 = arith.constant 0 : index
    %39 = vector.load %arg4[%c1, %c0_13, %c0_14] : memref<3x8x24xf32, #tpu.memory_space<vmem>>, vector<1x8x24xf32>
    %40 = vector.shape_cast %39 : vector<1x8x24xf32> to vector<8x24xf32>
    %c1_i32_15 = arith.constant 1 : i32
    %41 = tpu.dynamic_rotate %16 by %c1_i32_15 dim 1 : vector<8x512xf32>, i32 -> vector<8x512xf32>
    %c0_i32_16 = arith.constant 0 : i32
    %42 = arith.sitofp %c0_i32_16 : i32 to f32
    %43 = vector.shape_cast %7 : vector<1x512xi1> to vector<1x512xi1>
    %44 = vector.broadcast %43 : vector<1x512xi1> to vector<8x512xi1>
    %45 = vector.broadcast %42 : f32 to vector<8x512xf32>
    %46 = arith.select %44, %41, %45 : vector<8x512xi1>, vector<8x512xf32>
    %c511_i32 = arith.constant 511 : i32
    %47 = tpu.dynamic_rotate %16 by %c511_i32 dim 1 : vector<8x512xf32>, i32 -> vector<8x512xf32>
    %c0_i32_17 = arith.constant 0 : i32
    %48 = arith.sitofp %c0_i32_17 : i32 to f32
    %49 = vector.shape_cast %9 : vector<1x512xi1> to vector<1x512xi1>
    %50 = vector.broadcast %49 : vector<1x512xi1> to vector<8x512xi1>
    %51 = vector.broadcast %48 : f32 to vector<8x512xf32>
    %52 = arith.select %50, %47, %51 : vector<8x512xi1>, vector<8x512xf32>
    %53 = tpu.concatenate %46, %16, %52 in 0 : vector<8x512xf32>, vector<8x512xf32>, vector<8x512xf32> -> vector<24x512xf32>
    %cst_18 = arith.constant dense<0.000000e+00> : vector<8x512xf32>
    %54 = tpu.matmul %40, %53, %cst_18 {dimension_numbers = #tpu.dot_dimension_numbers<[1], [0], [0], [1], [0, 0, 1, 1], [], []>} : vector<8x24xf32>, vector<24x512xf32>, vector<8x512xf32> -> vector<8x512xf32>
    %55 = arith.addf %38, %54 : vector<8x512xf32>
    %c2 = arith.constant 2 : index
    %c0_19 = arith.constant 0 : index
    %c0_20 = arith.constant 0 : index
    %56 = vector.load %arg4[%c2, %c0_19, %c0_20] : memref<3x8x24xf32, #tpu.memory_space<vmem>>, vector<1x8x24xf32>
    %57 = vector.shape_cast %56 : vector<1x8x24xf32> to vector<8x24xf32>
    %c497_i32 = arith.constant 497 : i32
    %58 = tpu.dynamic_rotate %16 by %c497_i32 dim 1 : vector<8x512xf32>, i32 -> vector<8x512xf32>
    %c0_i32_21 = arith.constant 0 : i32
    %59 = arith.sitofp %c0_i32_21 : i32 to f32
    %60 = vector.shape_cast %12 : vector<1x512xi1> to vector<1x512xi1>
    %61 = vector.broadcast %60 : vector<1x512xi1> to vector<8x512xi1>
    %62 = vector.broadcast %59 : f32 to vector<8x512xf32>
    %63 = arith.select %61, %58, %62 : vector<8x512xi1>, vector<8x512xf32>
    %c496_i32 = arith.constant 496 : i32
    %64 = tpu.dynamic_rotate %16 by %c496_i32 dim 1 : vector<8x512xf32>, i32 -> vector<8x512xf32>
    %c0_i32_22 = arith.constant 0 : i32
    %65 = arith.sitofp %c0_i32_22 : i32 to f32
    %66 = vector.shape_cast %5 : vector<1x512xi1> to vector<1x512xi1>
    %67 = vector.broadcast %66 : vector<1x512xi1> to vector<8x512xi1>
    %68 = vector.broadcast %65 : f32 to vector<8x512xf32>
    %69 = arith.select %67, %64, %68 : vector<8x512xi1>, vector<8x512xf32>
    %c495_i32 = arith.constant 495 : i32
    %70 = tpu.dynamic_rotate %16 by %c495_i32 dim 1 : vector<8x512xf32>, i32 -> vector<8x512xf32>
    %c0_i32_23 = arith.constant 0 : i32
    %71 = arith.sitofp %c0_i32_23 : i32 to f32
    %72 = vector.shape_cast %13 : vector<1x512xi1> to vector<1x512xi1>
    %73 = vector.broadcast %72 : vector<1x512xi1> to vector<8x512xi1>
    %74 = vector.broadcast %71 : f32 to vector<8x512xf32>
    %75 = arith.select %73, %70, %74 : vector<8x512xi1>, vector<8x512xf32>
    %76 = tpu.concatenate %63, %69, %75 in 0 : vector<8x512xf32>, vector<8x512xf32>, vector<8x512xf32> -> vector<24x512xf32>
    %cst_24 = arith.constant dense<0.000000e+00> : vector<8x512xf32>
    %77 = tpu.matmul %57, %76, %cst_24 {dimension_numbers = #tpu.dot_dimension_numbers<[1], [0], [0], [1], [0, 0, 1, 1], [], []>} : vector<8x24xf32>, vector<24x512xf32>, vector<8x512xf32> -> vector<8x512xf32>
    %78 = arith.addf %55, %77 : vector<8x512xf32>
    %c0_25 = arith.constant 0 : index
    %c0_26 = arith.constant 0 : index
    %79 = vector.load %arg5[%c0_25, %c0_26] : memref<8x1xf32, #tpu.memory_space<vmem>>, vector<8x1xf32>
    %80 = vector.broadcast %79 : vector<8x1xf32> to vector<8x512xf32>
    %81 = arith.addf %78, %80 : vector<8x512xf32>
    %cst_27 = arith.constant 0.000000e+00 : f32
    %82 = vector.broadcast %cst_27 : f32 to vector<8x512xf32>
    %83 = arith.maximumf %81, %82 : vector<8x512xf32>
    %c0_28 = arith.constant 0 : index
    %c0_29 = arith.constant 0 : index
    %c0_30 = arith.constant 0 : index
    %84 = vector.load %arg6[%c0_28, %c0_29, %c0_30] : memref<3x8x24xf32, #tpu.memory_space<vmem>>, vector<1x8x24xf32>
    %85 = vector.shape_cast %84 : vector<1x8x24xf32> to vector<8x24xf32>
    %c17_i32_31 = arith.constant 17 : i32
    %86 = tpu.dynamic_rotate %83 by %c17_i32_31 dim 1 : vector<8x512xf32>, i32 -> vector<8x512xf32>
    %c0_i32_32 = arith.constant 0 : i32
    %87 = arith.sitofp %c0_i32_32 : i32 to f32
    %88 = vector.shape_cast %10 : vector<1x512xi1> to vector<1x512xi1>
    %89 = vector.broadcast %88 : vector<1x512xi1> to vector<8x512xi1>
    %90 = vector.broadcast %87 : f32 to vector<8x512xf32>
    %91 = arith.select %89, %86, %90 : vector<8x512xi1>, vector<8x512xf32>
    %c16_i32_33 = arith.constant 16 : i32
    %92 = tpu.dynamic_rotate %83 by %c16_i32_33 dim 1 : vector<8x512xf32>, i32 -> vector<8x512xf32>
    %c0_i32_34 = arith.constant 0 : i32
    %93 = arith.sitofp %c0_i32_34 : i32 to f32
    %94 = vector.shape_cast %3 : vector<1x512xi1> to vector<1x512xi1>
    %95 = vector.broadcast %94 : vector<1x512xi1> to vector<8x512xi1>
    %96 = vector.broadcast %93 : f32 to vector<8x512xf32>
    %97 = arith.select %95, %92, %96 : vector<8x512xi1>, vector<8x512xf32>
    %c15_i32_35 = arith.constant 15 : i32
    %98 = tpu.dynamic_rotate %83 by %c15_i32_35 dim 1 : vector<8x512xf32>, i32 -> vector<8x512xf32>
    %c0_i32_36 = arith.constant 0 : i32
    %99 = arith.sitofp %c0_i32_36 : i32 to f32
    %100 = vector.shape_cast %11 : vector<1x512xi1> to vector<1x512xi1>
    %101 = vector.broadcast %100 : vector<1x512xi1> to vector<8x512xi1>
    %102 = vector.broadcast %99 : f32 to vector<8x512xf32>
    %103 = arith.select %101, %98, %102 : vector<8x512xi1>, vector<8x512xf32>
    %104 = tpu.concatenate %91, %97, %103 in 0 : vector<8x512xf32>, vector<8x512xf32>, vector<8x512xf32> -> vector<24x512xf32>
    %cst_37 = arith.constant dense<0.000000e+00> : vector<8x512xf32>
    %105 = tpu.matmul %85, %104, %cst_37 {dimension_numbers = #tpu.dot_dimension_numbers<[1], [0], [0], [1], [0, 0, 1, 1], [], []>} : vector<8x24xf32>, vector<24x512xf32>, vector<8x512xf32> -> vector<8x512xf32>
    %c1_38 = arith.constant 1 : index
    %c0_39 = arith.constant 0 : index
    %c0_40 = arith.constant 0 : index
    %106 = vector.load %arg6[%c1_38, %c0_39, %c0_40] : memref<3x8x24xf32, #tpu.memory_space<vmem>>, vector<1x8x24xf32>
    %107 = vector.shape_cast %106 : vector<1x8x24xf32> to vector<8x24xf32>
    %c1_i32_41 = arith.constant 1 : i32
    %108 = tpu.dynamic_rotate %83 by %c1_i32_41 dim 1 : vector<8x512xf32>, i32 -> vector<8x512xf32>
    %c0_i32_42 = arith.constant 0 : i32
    %109 = arith.sitofp %c0_i32_42 : i32 to f32
    %110 = vector.shape_cast %7 : vector<1x512xi1> to vector<1x512xi1>
    %111 = vector.broadcast %110 : vector<1x512xi1> to vector<8x512xi1>
    %112 = vector.broadcast %109 : f32 to vector<8x512xf32>
    %113 = arith.select %111, %108, %112 : vector<8x512xi1>, vector<8x512xf32>
    %c511_i32_43 = arith.constant 511 : i32
    %114 = tpu.dynamic_rotate %83 by %c511_i32_43 dim 1 : vector<8x512xf32>, i32 -> vector<8x512xf32>
    %c0_i32_44 = arith.constant 0 : i32
    %115 = arith.sitofp %c0_i32_44 : i32 to f32
    %116 = vector.shape_cast %9 : vector<1x512xi1> to vector<1x512xi1>
    %117 = vector.broadcast %116 : vector<1x512xi1> to vector<8x512xi1>
    %118 = vector.broadcast %115 : f32 to vector<8x512xf32>
    %119 = arith.select %117, %114, %118 : vector<8x512xi1>, vector<8x512xf32>
    %120 = tpu.concatenate %113, %83, %119 in 0 : vector<8x512xf32>, vector<8x512xf32>, vector<8x512xf32> -> vector<24x512xf32>
    %cst_45 = arith.constant dense<0.000000e+00> : vector<8x512xf32>
    %121 = tpu.matmul %107, %120, %cst_45 {dimension_numbers = #tpu.dot_dimension_numbers<[1], [0], [0], [1], [0, 0, 1, 1], [], []>} : vector<8x24xf32>, vector<24x512xf32>, vector<8x512xf32> -> vector<8x512xf32>
    %122 = arith.addf %105, %121 : vector<8x512xf32>
    %c2_46 = arith.constant 2 : index
    %c0_47 = arith.constant 0 : index
    %c0_48 = arith.constant 0 : index
    %123 = vector.load %arg6[%c2_46, %c0_47, %c0_48] : memref<3x8x24xf32, #tpu.memory_space<vmem>>, vector<1x8x24xf32>
    %124 = vector.shape_cast %123 : vector<1x8x24xf32> to vector<8x24xf32>
    %c497_i32_49 = arith.constant 497 : i32
    %125 = tpu.dynamic_rotate %83 by %c497_i32_49 dim 1 : vector<8x512xf32>, i32 -> vector<8x512xf32>
    %c0_i32_50 = arith.constant 0 : i32
    %126 = arith.sitofp %c0_i32_50 : i32 to f32
    %127 = vector.shape_cast %12 : vector<1x512xi1> to vector<1x512xi1>
    %128 = vector.broadcast %127 : vector<1x512xi1> to vector<8x512xi1>
    %129 = vector.broadcast %126 : f32 to vector<8x512xf32>
    %130 = arith.select %128, %125, %129 : vector<8x512xi1>, vector<8x512xf32>
    %c496_i32_51 = arith.constant 496 : i32
    %131 = tpu.dynamic_rotate %83 by %c496_i32_51 dim 1 : vector<8x512xf32>, i32 -> vector<8x512xf32>
    %c0_i32_52 = arith.constant 0 : i32
    %132 = arith.sitofp %c0_i32_52 : i32 to f32
    %133 = vector.shape_cast %5 : vector<1x512xi1> to vector<1x512xi1>
    %134 = vector.broadcast %133 : vector<1x512xi1> to vector<8x512xi1>
    %135 = vector.broadcast %132 : f32 to vector<8x512xf32>
    %136 = arith.select %134, %131, %135 : vector<8x512xi1>, vector<8x512xf32>
    %c495_i32_53 = arith.constant 495 : i32
    %137 = tpu.dynamic_rotate %83 by %c495_i32_53 dim 1 : vector<8x512xf32>, i32 -> vector<8x512xf32>
    %c0_i32_54 = arith.constant 0 : i32
    %138 = arith.sitofp %c0_i32_54 : i32 to f32
    %139 = vector.shape_cast %13 : vector<1x512xi1> to vector<1x512xi1>
    %140 = vector.broadcast %139 : vector<1x512xi1> to vector<8x512xi1>
    %141 = vector.broadcast %138 : f32 to vector<8x512xf32>
    %142 = arith.select %140, %137, %141 : vector<8x512xi1>, vector<8x512xf32>
    %143 = tpu.concatenate %130, %136, %142 in 0 : vector<8x512xf32>, vector<8x512xf32>, vector<8x512xf32> -> vector<24x512xf32>
    %cst_55 = arith.constant dense<0.000000e+00> : vector<8x512xf32>
    %144 = tpu.matmul %124, %143, %cst_55 {dimension_numbers = #tpu.dot_dimension_numbers<[1], [0], [0], [1], [0, 0, 1, 1], [], []>} : vector<8x24xf32>, vector<24x512xf32>, vector<8x512xf32> -> vector<8x512xf32>
    %145 = arith.addf %122, %144 : vector<8x512xf32>
    %c0_56 = arith.constant 0 : index
    %c0_57 = arith.constant 0 : index
    %146 = vector.load %arg7[%c0_56, %c0_57] : memref<8x1xf32, #tpu.memory_space<vmem>>, vector<8x1xf32>
    %147 = vector.broadcast %146 : vector<8x1xf32> to vector<8x512xf32>
    %148 = arith.addf %145, %147 : vector<8x512xf32>
    %c0_58 = arith.constant 0 : index
    %c0_59 = arith.constant 0 : index
    %149 = vector.load %arg3[%c0_58, %c0_59] : memref<8x512xf32, #tpu.memory_space<vmem>>, vector<8x512xf32>
    %150 = arith.addf %148, %149 : vector<8x512xf32>
    %c0_60 = arith.constant 0 : index
    %c0_61 = arith.constant 0 : index
    %151 = vector.load %arg8[%c0_60, %c0_61] : memref<8x512xf32, #tpu.memory_space<vmem>>, vector<8x512xf32>
    tpu.vector_store %arg8[%c0_60, %c0_61], %150 {strides = array<i32>} : memref<8x512xf32, #tpu.memory_space<vmem>>, vector<8x512xf32>,
    return
  }
  func.func @transform_0(%arg0: i32) -> (i32, i32) {
    %c0_i32 = arith.constant 0 : i32
    %c0_i32_0 = arith.constant 0 : i32
    %c0_i32_1 = arith.constant 0 : i32
    return %c0_i32, %c0_i32_0 : i32, i32
  }
  func.func @transform_1(%arg0: i32) -> (i32, i32) {
    %c0_i32 = arith.constant 0 : i32
    %c0_i32_0 = arith.constant 0 : i32
    %c0_i32_1 = arith.constant 0 : i32
    return %c0_i32, %c0_i32_0 : i32, i32
  }
  func.func @transform_2(%arg0: i32) -> (i32, i32) {
    %c0_i32 = arith.constant 0 : i32
    %c0_i32_0 = arith.constant 0 : i32
    return %c0_i32, %arg0 : i32, i32
  }
  func.func @transform_3(%arg0: i32) -> (i32, i32, i32) {
    %c0_i32 = arith.constant 0 : i32
    %c0_i32_0 = arith.constant 0 : i32
    %c0_i32_1 = arith.constant 0 : i32
    %c0_i32_2 = arith.constant 0 : i32
    return %c0_i32, %c0_i32_0, %c0_i32_1 : i32, i32, i32
  }
  func.func @transform_4(%arg0: i32) -> (i32, i32) {
    %c0_i32 = arith.constant 0 : i32
    %c0_i32_0 = arith.constant 0 : i32
    %c0_i32_1 = arith.constant 0 : i32
    return %c0_i32, %c0_i32_0 : i32, i32
  }
  func.func @transform_5(%arg0: i32) -> (i32, i32, i32) {
    %c0_i32 = arith.constant 0 : i32
    %c0_i32_0 = arith.constant 0 : i32
    %c0_i32_1 = arith.constant 0 : i32
    %c0_i32_2 = arith.constant 0 : i32
    return %c0_i32, %c0_i32_0, %c0_i32_1 : i32, i32, i32
  }
  func.func @transform_6(%arg0: i32) -> (i32, i32) {
    %c0_i32 = arith.constant 0 : i32
    %c0_i32_0 = arith.constant 0 : i32
    %c0_i32_1 = arith.constant 0 : i32
    return %c0_i32, %c0_i32_0 : i32, i32
  }
  func.func @transform_7(%arg0: i32) -> (i32, i32) {
    %c0_i32 = arith.constant 0 : i32
    %c0_i32_0 = arith.constant 0 : i32
    return %c0_i32, %arg0 : i32, i32
  }
}

</mosaic_0001>

<bundles_post_ra>
// kernel: tpu_custom_call.1
= control target key start
LH: loop header
LB: loop body
LE: loop exit
PB: predicated region body
PF: predicated region fallthrough
CT: control target
= control target key end

     0   :  { %12 = vsyncpa [#allocation3], 0  ;;  %s2641_s0 = inlined_call_operand.vmem [shape: s32[1,512], index: 0, kind: input, shape index: {}]   ;;  %s2642_s1 = inlined_call_operand.hbm [shape: s32[1,512], index: 1, kind: input, shape index: {}]   ;;  %s2643_s2 = inlined_call_operand.hbm [shape: f32[8,512], index: 2, kind: input, shape index: {}]   ;;  %s2644_s3 = inlined_call_operand.vmem [shape: f32[3,8,24], index: 3, kind: input, shape index: {}]   ;;  %s2645_s4 = inlined_call_operand.vmem [shape: f32[8,1], index: 4, kind: input, shape index: {}]   ;;  %s2646_s5 = inlined_call_operand.hbm [shape: f32[3,8,24], index: 5, kind: input, shape index: {}]   ;;  %s2647_s6 = inlined_call_operand.vmem [shape: f32[8,1], index: 6, kind: input, shape index: {}]   ;;  %s2648_s7 = inlined_call_operand.hbm [shape: f32[8,512], index: 7, kind: output, shape index: {}]  }
   0x1   :  { %13 = vsyncpa [#allocation6], 0 }
   0x2   :  { %14 = vsyncpa [#allocation4], 0  ;;  %s1831_s24 = smov [#allocation5]   ;;  %s1832_s26 = smov [#allocation2]  }
   0x3   :  { %s33_s25 = sshll.u32 %s1831_s24, 4  ;;  %s23_s27 = sshll.u32 %s1832_s26, 4  ;;  %s34_s25 = int_to_ptr.vmem [resolvable:$true] %s33_s25  ;;  %s24_s27 = int_to_ptr.vmem [resolvable:$true] %s23_s27 }
   0x4   :  { %s1737_s30 = scalar_lea.hbm %s2643_s2, 512 }
   0x5   :  { %p1738_p0 = scmp.ne.s32.totalorder %s2643_s2, %s1737_s30  ;;  %p1741_p1 = scmp.lt.u32.totalorder %s1737_s30, %s2643_s2 }
   0x7   :  { %p1743_p2 = pnand %p1741_p1, %p1738_p0 }
   0x9   :  { %1746 = shalt.err (!%p1743_p2)
}
   0xa   :  { %s1747_s12 = scalar_lea.vmem %s34_s25, 512  ;;  %p1752_p4 = scmp.lt.s32.totalorder %s34_s25, %s34_s25 }
   0xb   :  { %p1748_p3 = scmp.ne.s32.totalorder %s34_s25, %s1747_s12  ;;  %p1753_p5 = scmp.lt.s32.totalorder %s1747_s12, %s1747_s12 }
   0xd   :  { %p1754_p6 = por %p1753_p5, %p1752_p4 }
   0xf   :  { %p1755_p7 = pnand %p1754_p6, %p1748_p3 }
  0x11   :  { %1758 = shalt.err (!%p1755_p7)
}
  0x12   :  { %36 = dma.hbm_to_vmem [thread:$0]  %s2643_s2, 512, %s34_s25, [#allocation6]  }
  0x13   :  { %s1759_s17 = scalar_lea.hbm %s2642_s1, 64 }
  0x14   :  { %p1760_p8 = scmp.ne.s32.totalorder %s2642_s1, %s1759_s17  ;;  %p1763_p9 = scmp.lt.u32.totalorder %s1759_s17, %s2642_s1 }
  0x16   :  { %p1765_p10 = pnand %p1763_p9, %p1760_p8 }
  0x18   :  { %1768 = shalt.err (!%p1765_p10)
}
  0x19   :  { %s1769_s22 = scalar_lea.vmem %s24_s27, 64  ;;  %p1774_p12 = scmp.lt.s32.totalorder %s24_s27, %s24_s27 }
  0x1a   :  { %p1770_p11 = scmp.ne.s32.totalorder %s24_s27, %s1769_s22  ;;  %p1775_p13 = scmp.lt.s32.totalorder %s1769_s22, %s1769_s22 }
  0x1c   :  { %p1776_p0 = por %p1775_p13, %p1774_p12 }
  0x1e   :  { %p1777_p1 = pnand %p1776_p0, %p1770_p11 }
  0x20   :  { %1780 = shalt.err (!%p1777_p1)
}
  0x21   :  { %26 = dma.hbm_to_vmem [thread:$0]  %s2642_s1, 64, %s24_s27, [#allocation3]  }
  0x22   :  { %s1833_s24 = smov [#allocation7]   ;;  %s1781_s29 = scalar_lea.hbm %s2646_s5, 384 }
  0x23   :  { %s46_s25 = sshll.u32 %s1833_s24, 4  ;;  %p1782_p2 = scmp.ne.s32.totalorder %s2646_s5, %s1781_s29  ;;  %s47_s25 = int_to_ptr.vmem [resolvable:$true] %s46_s25 }
  0x24   :  { %p1785_p3 = scmp.lt.u32.totalorder %s1781_s29, %s2646_s5 }
  0x26   :  { %p1787_p4 = pnand %p1785_p3, %p1782_p2 }
  0x28   :  { %1790 = shalt.err (!%p1787_p4)
}
  0x29   :  { %s1791_s11 = scalar_lea.vmem %s47_s25, 384  ;;  %p1796_p6 = scmp.lt.s32.totalorder %s47_s25, %s47_s25 }
  0x2a   :  { %p1792_p5 = scmp.ne.s32.totalorder %s47_s25, %s1791_s11  ;;  %p1797_p7 = scmp.lt.s32.totalorder %s1791_s11, %s1791_s11 }
  0x2c   :  { %p1798_p8 = por %p1797_p7, %p1796_p6 }
  0x2e   :  { %p1799_p9 = pnand %p1798_p8, %p1792_p5 }
  0x30   :  { %1802 = shalt.err (!%p1799_p9)
}
  0x31   :  { %s1834_s1 = smov 128   ;;  %s1835_s27 = smov 8  }
  0x32   :  { %52 = dma.hbm_to_vmem [thread:$0]  %s2646_s5, 384, %s47_s25, [#allocation6], %s1834_s1, %s1834_s1, %s1835_s27  }
  0x33   :  { %1825 = dma.done.wait [#allocation3], 64  }
  0x34   :  { %1826 = vsyncadd [#allocation3], 4294967232 }
  0x35   :  { %1827 = dma.done.wait [#allocation6], 896  }
  0x36   :  { %1828 = vsyncadd [#allocation6], 4294966400  ;;  %v1836_v0 = vmov 0   ;;  %v1925_v1 = vld [vmem:[#allocation5] sm:$0xff]  ;;  %v1927_v2 = vld [vmem:[#allocation5 + $0x8] sm:$0xff]  ;;  %s1837_s5 = smov 127   ;;  %v91_v13 = vlaneseq }
  0x37   :  { %1686 = vset.pattern.permute.xlu0 %v1836_v0  ;;  %v1929_v3 = vld [vmem:[#allocation5 + $0x10] sm:$0xff]  ;;  %v1932_v4 = vmax.f32 %v1925_v1, 0.0  ;;  %v1935_v5 = vmax.f32 %v1927_v2, 0.0  ;;  %v1937_v6 = vld [vmem:[#allocation5 + $0x18] sm:$0xff]  ;;  %s1838_s14 = smov 1   ;;  %v1839_v11 = vmov 0.0  }
  0x38   :  { %v1940_v7 = vmax.f32 %v1929_v3, 0.0  ;;  %v1943_v8 = vmax.f32 %v1937_v6, 0.0  ;;  %416 = vmatprep.mubr.f32.mxu1 %v1839_v11  ;;  %345 = vmatprep.mubr.f32.mxu0 %v1839_v11  ;;  %s1840_s15 = smov 17   ;;  %s1841_s16 = smov 16   ;;  %v833_v12 = vld [vmem:[%s2645_s4] sm:$0xff]  ;;  %v100_v15 = vshrl.u32 %v91_v13, 7 }
  0x39   :  { %239 = vrot.lane.b32.xlu1 %v1932_v4, %s1837_s5  ;;  %v1636_v9 = vpack.i.bf16 %v1935_v5, %v1932_v4  ;;  %s1842_s17 = smov 15   ;;  %s1843_s18 = smov 113   ;;  %v1988_v14 = vld [vmem:[#allocation2] sm:$0xf]  ;;  %v1999_v20 = vand.u32 127, %v91_v13  ;;  %vm1846_vm5 = vmmov 1  }
  0x3a   :  { %v1641_v10 = vpack.i.bf16 %v1943_v8, %v1940_v7  ;;  %s1844_s19 = smov 112   ;;  %s1845_s20 = smov 111   ;;  %vm2651_vm0 = vcmp.ge.s32.totalorder %v1988_v14, 1  ;;  %v1991_v16 = vsub.s32 1, %v100_v15  ;;  %v1997_v19 = vsub.s32 0, %v100_v15 }
  0x3b   :  { %1637 = vrot.lane.b32.xlu0 %v1636_v9, %s1838_s14  ;;  %v214_v17 = vsel %vm2651_vm0, 1, %v1836_v0  ;;  %v2001_v21 = vsub.s32 3, %v100_v15  ;;  %vm2650_vm1 = vcmp.le.s32.totalorder %v1988_v14, 14  ;;  %v2004_v22 = vsub.s32 2, %v100_v15  ;;  %v2009_v23 = vld [vmem:[%s2641_s0] sm:$0xf] }
  0x3c   :  { %v222_v18 = vrot.slane %v214_v17, %v1991_v16  ;;  %v218_v25 = vrot.slane %v214_v17, %v1997_v19  ;;  %v252_v26 = vsel %vm2650_vm1, 1, %v1836_v0  ;;  %vm2649_vm3 = vcmp.lt.s32.totalorder %v1999_v20, 1 }
  0x3d   :  { %241 = vrot.lane.b32.xlu1 %v1935_v5, %s1837_s5  ;;  %v230_v28 = vrot.slane %v214_v17, %v2001_v21  ;;  %vm66_vm4 = vcmp.ge.s32.totalorder %v2009_v23, 1  ;;  %v226_v31 = vrot.slane %v214_v17, %v2004_v22  ;;  %v2683_v33 = vmov 0 }
  0x3e   :  { %vm232_vm2 = vcmp.eq.s32.totalorder %v222_v18, 1  ;;  %v260_v34 = vrot.slane %v252_v26, %v1991_v16  ;;  %vm2031_vm7 = vcmp.eq.s32.totalorder %v218_v25, 1  ;;  %vm2039_vm8 = vmand %vm66_vm4, %vm2651_vm0  ;;  %v2046_v38 = vsel %vm66_vm4, 1, %v1836_v0 }
  0x3f   :  { %1642 = vrot.lane.b32.xlu0 %v1641_v10, %s1838_s14  ;;  %vm2024_vm6 = vmpackc.low %vm1846_vm5, %vm232_vm2  ;;  %vm2652_vm9 = vcmp.lt.s32.totalorder %v1999_v20, 127  ;;  %vm2050_vm10 = vcmp.eq.s32.totalorder %v230_v28, 1  ;;  %v268_v42 = vrot.slane %v252_v26, %v2001_v21  ;;  %vm2055_vm11 = vcmp.eq.s32.totalorder %v226_v31, 1 }
  0x40   :  { %v2684_v33 = vsel %vm2024_vm6, 4294967295, %v2683_v33  ;;  %v256_v46 = vrot.slane %v252_v26, %v1997_v19  ;;  %vm2066_vm13 = vmpackc.low %vm1846_vm5, %vm2031_vm7  ;;  %v2693_v48 = vmov 0  ;;  %vm2070_vm14 = vcmp.eq.s32.totalorder %v260_v34, 1 }
  0x41   :  { %245 = vrot.lane.b32.xlu1 %v1943_v8, %s1837_s5  ;;  %v2694_v48 = vsel %vm2066_vm13, 4294967295, %v2693_v48  ;;  %v2695_v49 = vmov 0  ;;  %v264_v50 = vrot.slane %v252_v26, %v2004_v22  ;;  %v98_v51 = vsel %vm2039_vm8, 1, %v1836_v0  ;;  %vm2087_vm15 = vmpackc.low %vm1846_vm5, %vm2050_vm10 }
  0x42   :  { %v2696_v49 = vsel %vm2070_vm14, 4294967295, %v2695_v49  ;;  %v152_v52 = vrot.slane %v2046_v38, %v2001_v21  ;;  %v2697_v55 = vmov 0  ;;  %v144_v57 = vrot.slane %v2046_v38, %v1991_v16  ;;  %vm2101_vm2 = vmpackc.low %vm1846_vm5, %vm2055_vm11 }
  0x43   :  { %243 = vrot.lane.b32.xlu0 %v1940_v7, %s1837_s5  ;;  %v2698_v55 = vsel %vm2087_vm15, 4294967295, %v2697_v55  ;;  %v2699_v62 = vmov 0  ;;  %v148_v63 = vrot.slane %v2046_v38, %v2004_v22  ;;  %vm2110_vm7 = vcmp.eq.s32.totalorder %v268_v42, 1  ;;  %vm2120_vm5 = vmand %vm66_vm4, %vm2650_vm1  ;;  %v847_v42 = vld [vmem:[#allocation7] sm:$0xff] }
  0x44   :  { %v2700_v62 = vsel %vm2101_vm2, 4294967295, %v2699_v62  ;;  %vm2128_vm10 = vcmp.eq.s32.totalorder %v256_v46, 1  ;;  %vm2132_vm11 = vcmp.eq.s32.totalorder %v264_v50, 1  ;;  %v106_v13 = vrot.slane %v98_v51, %v1991_v16 }
  0x45   :  { %1652 = vrot.lane.b32.xlu1 %v1641_v10, %s1840_s15  ;;  %vm2144_vm4 = vcmp.eq.s32.totalorder %v152_v52, 1  ;;  %v2709_v17 = vmov 0  ;;  %v110_v18 = vrot.slane %v98_v51, %v2004_v22  ;;  %v140_v25 = vrot.slane %v2046_v38, %v1997_v19 }
  0x46   :  { %v2710_v17 = vsel %vm2144_vm4, 4294967295, %v2709_v17  ;;  %vm2157_vm0 = vcmp.eq.s32.totalorder %v144_v57, 1  ;;  %vm2161_vm8 = vcmp.eq.s32.totalorder %v148_v63, 1  ;;  %v174_v31 = vsel %vm2120_vm5, 1, %v1836_v0 }
  0x47   :  { %1647 = vrot.lane.b32.xlu0 %v1636_v9, %s1840_s15  ;;  %v2715_v37 = vmov 0  ;;  %vm2181_vm5 = vcmp.eq.s32.totalorder %v106_v13, 1  ;;  %vm2187_vm12 = vcmp.eq.s32.totalorder %v110_v18, 1  ;;  %v2723_v46 = vmov 0 }
  0x48   :  { %v190_v50 = vrot.slane %v174_v31, %v2001_v21  ;;  %v186_v18 = vrot.slane %v174_v31, %v2004_v22 }
  0x49   :  { %1662 = vrot.lane.b32.xlu1 %v1641_v10, %s1841_s16 }
  0x4b   :  { %1657 = vrot.lane.b32.xlu0 %v1636_v9, %s1841_s16 }
  0x4d   :  { %163 = vrot.lane.b32.xlu1 %v1935_v5, %s1842_s17 }
  0x4f   :  { %161 = vrot.lane.b32.xlu0 %v1932_v4, %s1842_s17 }
  0x51   :  { %167 = vrot.lane.b32.xlu1 %v1943_v8, %s1842_s17 }
  0x53   :  { %165 = vrot.lane.b32.xlu0 %v1940_v7, %s1842_s17 }
  0x55   :  { %1672 = vrot.lane.b32.xlu1 %v1641_v10, %s1843_s18 }
  0x57   :  { %1667 = vrot.lane.b32.xlu0 %v1636_v9, %s1843_s18 }
  0x59   :  { %1682 = vrot.lane.b32.xlu1 %v1641_v10, %s1844_s19  ;;  %v2705_v10 = vmov 0 }
  0x5a   :  { %v2706_v10 = vsel %vm2128_vm10, 4294967295, %v2705_v10 }
  0x5b   :  { %1677 = vrot.lane.b32.xlu0 %v1636_v9, %s1844_s19 }
  0x5d   :  { %648 = vrot.lane.b32.xlu1 %v1935_v5, %s1845_s20 }
  0x5f   :  { %646 = vrot.lane.b32.xlu0 %v1932_v4, %s1845_s20 }
  0x61   :  { %652 = vrot.lane.b32.xlu1 %v1943_v8, %s1845_s20 }
  0x63   :  { %650 = vrot.lane.b32.xlu0 %v1940_v7, %s1845_s20 }
  0x67   :  { %836 = vperm.xlu0 %1686, %v833_v12   ;;  %v2707_v12 = vmov 0 }
  0x68   :  { %v2708_v12 = vsel %vm2132_vm11, 4294967295, %v2707_v12 }
  0xab   :  { %v2011_v24 = vpop.permute.xlu1 %239 }
  0xad   :  { %v1638_v27 = vpop.permute.xlu0 %1637 }
  0xae   :  { %v1640_v29 = vunpack.i.h.bf16 %v1638_v27  ;;  %v1639_v30 = vunpack.i.l.bf16 %v1638_v27  ;;  %v1453_v27 = vld [vmem:[%s2644_s3 + $0x8] sm:$0xff] }
  0xaf   :  { %v2021_v32 = vpop.permute.xlu1 %241 }
  0xb0   :  { %v212_v35 = vsel %vm2649_vm3, %v1639_v30, %v1640_v29  ;;  %v250_v34 = vsel %vm2652_vm9, %v2011_v24, %v2021_v32 }
  0xb1   :  { %v1643_v39 = vpop.permute.xlu0 %1642  ;;  %v1531_v40 = vpack.c.bf16 %v1935_v5, %v212_v35 }
  0xb2   :  { %v1645_v43 = vunpack.i.h.bf16 %v1643_v39  ;;  %v1644_v44 = vunpack.i.l.bf16 %v1643_v39 }
  0xb3   :  { %v246_v47 = vpop.permute.xlu1 %245  ;;  %1533 = vmatprep.subr.msk.bf16.mxu0 %vm2024_vm6, %v1531_v40 }
  0xb4   :  { %v213_v53 = vsel %vm2649_vm3, %v1645_v43, %v1639_v30  ;;  %v210_v54 = vsel %vm2649_vm3, %v1644_v44, %v1645_v43  ;;  %v211_v56 = vsel %vm2649_vm3, %v1640_v29, %v1644_v44  ;;  %vm2656_vm3 = vcmask 195584  }
  0xb5   :  { %v244_v58 = vpop.permute.xlu0 %243  ;;  %v1534_v59 = vpack.c.bf16 %v1932_v4, %v213_v53  ;;  %v1537_v60 = vpack.c.bf16 %v1943_v8, %v210_v54  ;;  %v1540_v61 = vpack.c.bf16 %v1940_v7, %v211_v56  ;;  %v2701_v4 = vmov 0 }
  0xb6   :  { %v249_v5 = vsel %vm2652_vm9, %v2021_v32, %v244_v58  ;;  %v2702_v4 = vsel %vm2110_vm7, 4294967295, %v2701_v4  ;;  %v114_v7 = vrot.slane %v98_v51, %v2001_v21  ;;  %v251_v15 = vsel %vm2652_vm9, %v246_v47, %v2011_v24 }
  0xb7   :  { %v1653_v9 = vpop.permute.xlu1 %1652  ;;  %1536 = vmatpush1.bf16.msk.msra.mxu0 %vm2066_vm13, %v1534_v59  ;;  %1539 = vmatprep.subr.msk.bf16.mxu1 %vm2087_vm15, %v1537_v60  ;;  %v2713_v29 = vmov 0  ;;  %v102_v30 = vrot.slane %v98_v51, %v1997_v19  ;;  %v248_v38 = vsel %vm2652_vm9, %v244_v58, %v246_v47  ;;  %v2719_v32 = vmov 0 }
  0xb8   :  { %1456 = vmatprep.subr.msk.mxu0 %vm2070_vm14, %v249_v5  ;;  %1542 = vmatpush1.bf16.msk.msra.mxu1 %vm2101_vm2, %v1540_v61  ;;  %v2714_v29 = vsel %vm2161_vm8, 4294967295, %v2713_v29  ;;  %v1655_v35 = vunpack.i.h.bf16 %v1653_v9  ;;  %v1654_v36 = vunpack.i.l.bf16 %v1653_v9  ;;  %vm2173_vm1 = vcmp.eq.s32.totalorder %v114_v7, 1 }
  0xb9   :  { %v1648_v26 = vpop.permute.xlu0 %1647  ;;  %1461 = vmatprep.subr.msk.mxu1 %vm2110_vm7, %v251_v15  ;;  %v2716_v37 = vsel %vm2173_vm1, 4294967295, %v2715_v37  ;;  %v2720_v32 = vsel %vm2187_vm12, 4294967295, %v2719_v32  ;;  %vm2192_vm9 = vcmp.eq.s32.totalorder %v140_v25, 1  ;;  %v2721_v43 = vmov 0 }
  0xba   :  { %v1650_v39 = vunpack.i.h.bf16 %v1648_v26  ;;  %v1649_v40 = vunpack.i.l.bf16 %v1648_v26  ;;  %v2722_v43 = vsel %vm2192_vm9, 4294967295, %v2721_v43  ;;  %v182_v47 = vrot.slane %v174_v31, %v1991_v16 }
  0xbb   :  { %v1663_v41 = vpop.permute.xlu1 %1662  ;;  %1457 = vmatpush1.msk.msra.mxu0 %vm2128_vm10, %v250_v34  ;;  %vm2725_vm7 = vcmp.lt.s32.totalorder %v1999_v20, 17  ;;  %v178_v54 = vrot.slane %v174_v31, %v1997_v19  ;;  %vm2730_vm15 = vcmp.ge.s32.totalorder %v1988_v14, 1  ;;  %v2736_v25 = vmov 0 }
  0xbc   :  { %v1665_v24 = vunpack.i.h.bf16 %v1663_v41  ;;  %1462 = vmatpush1.msk.msra.mxu1 %vm2132_vm11, %v248_v38  ;;  %1458 = vmatmul.mubr.msk.f32.vlgmr.msra.gmra.mrb[0].mxu0 %vm2656_vm3, %v1453_v27  ;;  %v1664_v44 = vunpack.i.l.bf16 %v1663_v41  ;;  %vm2202_vm11 = vcmp.eq.s32.totalorder %v102_v30, 1  ;;  %v94_v51 = vsel %vm2725_vm7, %v1654_v36, %v1655_v35  ;;  %vm2726_vm10 = vmmov %vm2725_vm7 }
  0xbd   :  { %v1658_v45 = vpop.permute.xlu0 %1657  ;;  %1463 = vmatmul.mubr.msk.f32.vlgmr.msra.gmra.mrb[0].mxu1 %vm2656_vm3, %v1453_v27  ;;  %v2724_v46 = vsel %vm2202_vm11, 4294967295, %v2723_v46  ;;  %490 = vmatprep.mubr.f32.mxu0 %v1839_v11  ;;  %v95_v56 = vsel %vm2726_vm10, %v1650_v39, %v1654_v36  ;;  %vm2727_vm2 = vmmov %vm2725_vm7  ;;  %vm2729_vm7 = vcmp.lt.s32.totalorder %v1999_v20, 16  ;;  %vm2731_vm3 = vcmp.le.s32.totalorder %v2009_v23, 14 }
  0xbe   :  { %v1660_v52 = vunpack.i.h.bf16 %v1658_v45  ;;  %v1659_v53 = vunpack.i.l.bf16 %v1658_v45  ;;  %561 = vmatprep.mubr.f32.mxu1 %v1839_v11  ;;  %v96_v57 = vsel %vm2727_vm2, %v1649_v40, %v1650_v39  ;;  %vm2728_vm14 = vmmov %vm2727_vm2  ;;  %v132_v59 = vsel %vm2729_vm7, %v1664_v44, %v1665_v24 }
  0xbf   :  { %v97_v58 = vsel %vm2728_vm14, %v1655_v35, %v1649_v40  ;;  %v164_v60 = vpop.permute.xlu1 %163  ;;  %vm72_vm13 = vmand %vm2731_vm3, %vm2730_vm15  ;;  %v1549_v61 = vpack.c.bf16 %v132_v59, %v94_v51  ;;  %vm2249_vm15 = vcmp.eq.s32.totalorder %v182_v47, 1  ;;  %v2741_v34 = vmov 0 }
  0xc0   :  { %vm2732_vm6 = vmmov %vm2729_vm7  ;;  %v2737_v25 = vsel %vm2249_vm15, 4294967295, %v2736_v25  ;;  %v583_v26 = vsel %vm72_vm13, 1, %v1836_v0  ;;  %vm2274_vm13 = vcmp.eq.s32.totalorder %v190_v50, 1  ;;  %v2743_v36 = vmov 0 }
  0xc1   :  { %v133_v63 = vsel %vm2732_vm6, %v1660_v52, %v1664_v44  ;;  %vm2733_vm10 = vmmov %vm2732_vm6  ;;  %v162_v15 = vpop.permute.xlu0 %161  ;;  %v2742_v34 = vsel %vm2274_vm13, 4294967295, %v2741_v34  ;;  %v2745_v38 = vmov 0  ;;  %v591_v39 = vrot.slane %v583_v26, %v1991_v16 }
  0xc2   :  { %v134_v5 = vsel %vm2733_vm10, %v1659_v53, %v1660_v52  ;;  %vm2734_vm2 = vmmov %vm2732_vm6  ;;  %v1552_v13 = vpack.c.bf16 %v133_v63, %v95_v56  ;;  %vm2739_vm10 = vcmp.le.s32.totalorder %v2009_v23, 14  ;;  %v599_v45 = vrot.slane %v583_v26, %v2001_v21 }
  0xc3   :  { %v135_v7 = vsel %vm2734_vm2, %v1665_v24, %v1659_v53  ;;  %vm2662_vm14 = vmpackc.low %vm2161_vm8, %vm2187_vm12  ;;  %v1543_v8 = vpack.c.bf16 %v134_v5, %v96_v57  ;;  %v168_v27 = vpop.permute.xlu1 %167  ;;  %v621_v30 = vsel %vm2739_vm10, 1, %v1836_v0  ;;  %vm2740_vm2 = vcmp.lt.s32.totalorder %v1999_v20, 15  ;;  %v82_v24 = vld [vmem:[%s2644_s3] sm:$0xff] }
  0xc4   :  { %v1546_v9 = vpack.c.bf16 %v135_v7, %v97_v58  ;;  %vm2663_vm3 = vmpackc.low %vm2192_vm9, %vm2202_vm11  ;;  %v172_v31 = vsel %vm2740_vm2, %v162_v15, %v164_v60  ;;  %v629_v44 = vrot.slane %v621_v30, %v1991_v16  ;;  %v637_v51 = vrot.slane %v621_v30, %v2001_v21  ;;  %v1221_v7 = vld [vmem:[#allocation7 + $0x10] sm:$0xff] }
  0xc5   :  { %vm2735_vm6 = vmpackc.low %vm2144_vm4, %vm2173_vm1  ;;  %v166_v35 = vpop.permute.xlu0 %165  ;;  %v587_v52 = vrot.slane %v583_v26, %v1997_v19  ;;  %v625_v53 = vrot.slane %v621_v30, %v1997_v19  ;;  %vm2751_vm12 = vcmask 195584   ;;  %vm2771_vm4 = vcmp.lt.s32.totalorder %v1999_v20, 112 }
  0xc6   :  { %1551 = vmatprep.subr.msk.bf16.mxu1 %vm2735_vm6, %v1549_v61  ;;  %vm2738_vm7 = vmpackc.low %vm2157_vm0, %vm2181_vm5  ;;  %vm2280_vm6 = vcmp.eq.s32.totalorder %v178_v54, 1  ;;  %v171_v41 = vsel %vm2740_vm2, %v164_v60, %v166_v35 }
  0xc7   :  { %1545 = vmatprep.subr.msk.bf16.mxu0 %vm2738_vm7, %v1543_v8  ;;  %1554 = vmatpush1.bf16.msk.msra.mxu1 %vm2662_vm14, %v1552_v13  ;;  %v2744_v36 = vsel %vm2280_vm6, 4294967295, %v2743_v36  ;;  %vm2284_vm7 = vcmp.eq.s32.totalorder %v186_v18, 1  ;;  %vm2747_vm10 = vmmov %vm2740_vm2  ;;  %v1673_v50 = vpop.permute.xlu1 %1672 }
  0xc8   :  { %1548 = vmatpush1.bf16.msk.msra.mxu0 %vm2663_vm3, %v1546_v9  ;;  %v2746_v38 = vsel %vm2284_vm7, 4294967295, %v2745_v38  ;;  %v170_v40 = vsel %vm2747_vm10, %v166_v35, %v168_v27  ;;  %vm2748_vm14 = vmmov %vm2740_vm2  ;;  %vm2749_vm10 = vcmp.le.s32.totalorder %v1988_v14, 14  ;;  %vm2750_vm2 = vcmp.le.s32.totalorder %v2009_v23, 14 }
  0xc9   :  { %1468 = vmatprep.subr.msk.mxu0 %vm2249_vm15, %v172_v31  ;;  %v173_v47 = vsel %vm2748_vm14, %v168_v27, %v162_v15  ;;  %1475 = vmatprep.subr.msk.mxu1 %vm2274_vm13, %v170_v40  ;;  %vm73_vm3 = vmand %vm2750_vm2, %vm2749_vm10  ;;  %v1668_v54 = vpop.permute.xlu0 %1667  ;;  %v595_v14 = vrot.slane %v583_v26, %v2004_v22  ;;  %v633_v23 = vrot.slane %v621_v30, %v2004_v22  ;;  %vm2319_vm10 = vcmp.eq.s32.totalorder %v591_v39, 1 }
  0xca   :  { %vm2752_vm8 = vmmov %vm2751_vm12  ;;  %vm2323_vm2 = vcmp.eq.s32.totalorder %v629_v44, 1  ;;  %vm2327_vm14 = vcmp.eq.s32.totalorder %v599_v45, 1  ;;  %v659_v59 = vsel %vm73_vm3, 1, %v1836_v0  ;;  %v1674_v60 = vunpack.i.l.bf16 %v1673_v50 }
  0xcb   :  { %1476 = vmatpush1.msk.msra.mxu1 %vm2284_vm7, %v171_v41  ;;  %v1670_v61 = vunpack.i.h.bf16 %v1668_v54  ;;  %v1669_v63 = vunpack.i.l.bf16 %v1668_v54  ;;  %v1683_v5 = vpop.permute.xlu1 %1682  ;;  %v1675_v8 = vunpack.i.h.bf16 %v1673_v50  ;;  %vm2342_vm13 = vcmp.eq.s32.totalorder %v625_v53, 1  ;;  %vm2773_vm9 = vmmov %vm2771_vm4 }
  0xcc   :  { %1469 = vmatpush1.msk.msra.mxu0 %vm2280_vm6, %v173_v47  ;;  %1477 = vmatmul.mubr.msk.f32.vlgmr.msra.gmra.mrb[0].mxu1 %vm2752_vm8, %v82_v24  ;;  %v1685_v9 = vunpack.i.h.bf16 %v1683_v5  ;;  %vm2338_vm8 = vcmp.eq.s32.totalorder %v587_v52, 1  ;;  %v1684_v15 = vunpack.i.l.bf16 %v1683_v5  ;;  %vm2346_vm3 = vcmp.eq.s32.totalorder %v595_v14, 1 }
  0xcd   :  { %1470 = vmatmul.mubr.msk.f32.vlgmr.msra.gmra.mrb[0].mxu0 %vm2751_vm12, %v82_v24  ;;  %822 = vmatprep.mubr.f32.mxu1 %v1839_v11  ;;  %vm2334_vm12 = vcmp.eq.s32.totalorder %v637_v51, 1  ;;  %v1678_v18 = vpop.permute.xlu0 %1677  ;;  %v2765_v26 = vmov 0  ;;  %vm2350_vm7 = vcmp.eq.s32.totalorder %v633_v23, 1  ;;  %v2767_v27 = vmov 0 }
  0xce   :  { %751 = vmatprep.mubr.f32.mxu0 %v1839_v11  ;;  %v2766_v26 = vsel %vm2346_vm3, 4294967295, %v2765_v26  ;;  %v2768_v27 = vsel %vm2350_vm7, 4294967295, %v2767_v27  ;;  %v675_v30 = vrot.slane %v659_v59, %v2001_v21  ;;  %v1680_v31 = vunpack.i.h.bf16 %v1678_v18 }
  0xcf   :  { %v1679_v35 = vunpack.i.l.bf16 %v1678_v18  ;;  %v667_v39 = vrot.slane %v659_v59, %v1991_v16  ;;  %v663_v40 = vrot.slane %v659_v59, %v1997_v19  ;;  %vm2769_vm15 = vcmp.lt.s32.totalorder %v1999_v20, 113  ;;  %v649_v44 = vpop.permute.xlu1 %648  ;;  %v1478_v18 = vld [vmem:[%s2644_s3 + $0x10] sm:$0xff] }
  0xd0   :  { %v580_v41 = vsel %vm2769_vm15, %v1670_v61, %v1674_v60  ;;  %vm2770_vm1 = vmmov %vm2769_vm15  ;;  %v617_v21 = vsel %vm2771_vm4, %v1684_v15, %v1685_v9  ;;  %v671_v45 = vrot.slane %v659_v59, %v2004_v22  ;;  %v618_v19 = vsel %vm2773_vm9, %v1680_v31, %v1684_v15 }
  0xd1   :  { %v581_v24 = vsel %vm2770_vm1, %v1669_v63, %v1670_v61  ;;  %vm2772_vm6 = vmmov %vm2770_vm1  ;;  %v1555_v51 = vpack.c.bf16 %v618_v19, %v580_v41  ;;  %v647_v54 = vpop.permute.xlu0 %646  ;;  %v2777_v23 = vmov 0  ;;  %v2781_v61 = vmov 0 }
  0xd2   :  { %v582_v16 = vsel %vm2772_vm6, %v1675_v8, %v1669_v63  ;;  %vm2774_vm15 = vmmov %vm2771_vm4  ;;  %v2783_v5 = vmov 0 }
  0xd3   :  { %v619_v47 = vsel %vm2774_vm15, %v1679_v35, %v1680_v31  ;;  %vm2775_vm1 = vmmov %vm2771_vm4  ;;  %vm2674_vm15 = vcmp.lt.s32.totalorder %v1999_v20, 111  ;;  %v653_v59 = vpop.permute.xlu1 %652 }
  0xd4   :  { %v620_v50 = vsel %vm2775_vm1, %v1685_v9, %v1679_v35  ;;  %vm2675_vm4 = vmpackc.low %vm2342_vm13, %vm2338_vm8  ;;  %v1558_v52 = vpack.c.bf16 %v619_v47, %v581_v24 }
  0xd5   :  { %vm2776_vm11 = vmmov %vm2772_vm6  ;;  %v1561_v53 = vpack.c.bf16 %v620_v50, %v582_v16  ;;  %vm2390_vm6 = vcmp.eq.s32.totalorder %v675_v30, 1  ;;  %v651_v63 = vpop.permute.xlu0 %650 }
  0xd6   :  { %v579_v22 = vsel %vm2776_vm11, %v1674_v60, %v1675_v8  ;;  %vm2676_vm9 = vmpackc.low %vm2350_vm7, %vm2346_vm3  ;;  %v2778_v23 = vsel %vm2390_vm6, 4294967295, %v2777_v23  ;;  %v658_v60 = vsel %vm2674_vm15, %v653_v59, %v647_v54  ;;  %vm2427_vm15 = vcmp.eq.s32.totalorder %v671_v45, 1 }
  0xd7   :  { %v1564_v14 = vpack.c.bf16 %v617_v21, %v579_v22  ;;  %vm2779_vm11 = vmpackc.low %vm2323_vm2, %vm2319_vm10  ;;  %v2785_v8 = vmov 0  ;;  %vm2827_vm7 = vnez %v2720_v32 }
  0xd8   :  { %1557 = vmatprep.subr.msk.bf16.mxu0 %vm2779_vm11, %v1555_v51  ;;  %vm2780_vm1 = vmpackc.low %vm2334_vm12, %vm2327_vm14  ;;  %vm2417_vm11 = vcmp.eq.s32.totalorder %v667_v39, 1  ;;  %v2786_v8 = vsel %vm2427_vm15, 4294967295, %v2785_v8 }
  0xd9   :  { %1563 = vmatprep.subr.msk.bf16.mxu1 %vm2780_vm1, %v1561_v53  ;;  %1560 = vmatpush1.bf16.msk.msra.mxu0 %vm2675_vm4, %v1558_v52  ;;  %v2782_v61 = vsel %vm2417_vm11, 4294967295, %v2781_v61  ;;  %vm2423_vm1 = vcmp.eq.s32.totalorder %v663_v40, 1  ;;  %vm2787_vm4 = vcmp.lt.s32.totalorder %v1999_v20, 111  ;;  %v1419_v52 = vld [vmem:[%s2647_s6] sm:$0xff]  ;;  %s1847_s6 = smov [#allocation8]  }
  0xda   :  { %1566 = vmatpush1.bf16.msk.msra.mxu1 %vm2676_vm9, %v1564_v14  ;;  %v2784_v5 = vsel %vm2423_vm1, 4294967295, %v2783_v5  ;;  %v655_v9 = vsel %vm2787_vm4, %v651_v63, %v653_v59  ;;  %vm2788_vm9 = vmmov %vm2787_vm4  ;;  %s1443_s30 = sshll.u32 %s1847_s6, 4  ;;  %s1444_s30 = int_to_ptr.vmem [resolvable:$true] %s1443_s30 }
  0xdb   :  { %1490 = vmatprep.subr.msk.mxu1 %vm2390_vm6, %v658_v60  ;;  %v656_v15 = vsel %vm2788_vm9, %v649_v44, %v651_v63  ;;  %vm2789_vm6 = vmmov %vm2787_vm4  ;;  %vm2790_vm4 = vcmask 195584   ;;  %vm2793_vm9 = vnez %v2684_v33  ;;  %s1803_s8 = scalar_lea.vmem %s1444_s30, 512  ;;  %p1808_p11 = scmp.lt.s32.totalorder %s1444_s30, %s1444_s30 }
  0xdc   :  { %v657_v30 = vsel %vm2789_vm6, %v647_v54, %v649_v44  ;;  %1483 = vmatprep.subr.msk.mxu0 %vm2417_vm11, %v656_v15  ;;  %vm2791_vm3 = vmmov %vm2790_vm4  ;;  %p1804_p10 = scmp.ne.s32.totalorder %s1444_s30, %s1803_s8  ;;  %p1809_p12 = scmp.lt.s32.totalorder %s1803_s8, %s1803_s8 }
  0xdd   :  { %1484 = vmatpush1.msk.msra.mxu0 %vm2423_vm1, %v657_v30  ;;  %vm2798_vm1 = vnez %v2694_v48 }
  0xde   :  { %1491 = vmatpush1.msk.msra.mxu1 %vm2427_vm15, %v655_v9  ;;  %1485 = vmatmul.mubr.msk.f32.vlgmr.msra.gmra.mrb[0].mxu0 %vm2790_vm4, %v1478_v18  ;;  %p1810_p13 = por %p1809_p12, %p1808_p11 }
  0xdf   :  { %1492 = vmatmul.mubr.msk.f32.vlgmr.msra.gmra.mrb[0].mxu1 %vm2791_vm3, %v1478_v18  ;;  %997 = vmatprep.mubr.f32.mxu0 %v1839_v11  ;;  %vm2792_vm3 = vcmp.lt.s32.totalorder %v1999_v20, 1 }
  0xe0   :  { %1068 = vmatprep.mubr.f32.mxu1 %v1839_v11  ;;  %vm2794_vm6 = vmmov %vm2792_vm3  ;;  %p1811_p0 = pnand %p1810_p13, %p1804_p10 }
  0xe1   :  { %vm2795_vm4 = vmmov %vm2792_vm3 }
  0xe2   :  { %vm2796_vm15 = vmmov %vm2792_vm3 }
  0xe6   :  { %v837_v31 = vpop.permute.xlu0 %836 }
 0x1b1   :  { %v753_v35 = vpop.f32.mrb[0].mxu0 }
 0x1b2   :  { %v824_v39 = vpop.f32.mrb[0].mxu1  ;;  %v839_v40 = vadd.f32 %v837_v31, %v753_v35  ;;  %v755_v41 = vpop.f32.mrb[1].mxu0 }
 0x1b3   :  { %v826_v24 = vpop.f32.mrb[1].mxu1  ;;  %v841_v21 = vadd.f32 %v837_v31, %v824_v39  ;;  %v840_v44 = vadd.f32 %v837_v31, %v755_v41 }
 0x1b4   :  { %v842_v45 = vadd.f32 %v837_v31, %v826_v24  ;;  %v843_v16 = vmax.f32 %v839_v40, 0.0 }
 0x1b5   :  { %v844_v19 = vmax.f32 %v840_v44, 0.0  ;;  %v845_v47 = vmax.f32 %v841_v21, 0.0 }
 0x1b6   :  { %914 = vrot.lane.b32.xlu0 %v843_v16, %s1837_s5  ;;  %v846_v50 = vmax.f32 %v842_v45, 0.0 }
 0x1b7   :  { %v1687_v22 = vpack.i.bf16 %v844_v19, %v843_v16 }
 0x1b8   :  { %v1692_v51 = vpack.i.bf16 %v846_v50, %v845_v47 }
 0x1b9   :  { %1688 = vrot.lane.b32.xlu1 %v1687_v22, %s1838_s14 }
 0x1ba   :  { %918 = vrot.lane.b32.xlu0 %v845_v47, %s1837_s5 }
 0x1bd   :  { %1693 = vrot.lane.b32.xlu1 %v1692_v51, %s1838_s14 }
 0x1be   :  { %880 = vrot.lane.b32.xlu0 %v843_v16, %s1842_s17 }
 0x1c1   :  { %916 = vrot.lane.b32.xlu1 %v844_v19, %s1837_s5 }
 0x1c2   :  { %884 = vrot.lane.b32.xlu0 %v845_v47, %s1842_s17 }
 0x1c5   :  { %920 = vrot.lane.b32.xlu1 %v846_v50, %s1837_s5 }
 0x1c6   :  { %1698 = vrot.lane.b32.xlu0 %v1687_v22, %s1840_s15 }
 0x1c9   :  { %1703 = vrot.lane.b32.xlu1 %v1692_v51, %s1840_s15 }
 0x1ca   :  { %1708 = vrot.lane.b32.xlu0 %v1687_v22, %s1841_s16 }
 0x1cd   :  { %1713 = vrot.lane.b32.xlu1 %v1692_v51, %s1841_s16 }
 0x1ce   :  { %1718 = vrot.lane.b32.xlu0 %v1687_v22, %s1843_s18 }
 0x1d1   :  { %882 = vrot.lane.b32.xlu1 %v844_v19, %s1842_s17 }
 0x1d2   :  { %1728 = vrot.lane.b32.xlu0 %v1687_v22, %s1844_s19 }
 0x1d5   :  { %886 = vrot.lane.b32.xlu1 %v846_v50, %s1842_s17 }
 0x1d6   :  { %1254 = vrot.lane.b32.xlu0 %v843_v16, %s1845_s20 }
 0x1d9   :  { %1723 = vrot.lane.b32.xlu1 %v1692_v51, %s1843_s18 }
 0x1da   :  { %1258 = vrot.lane.b32.xlu0 %v845_v47, %s1845_s20 }
 0x1dd   :  { %1733 = vrot.lane.b32.xlu1 %v1692_v51, %s1844_s19 }
 0x1de   :  { %1422 = vperm.xlu0 %1686, %v1419_v52  }
 0x1e1   :  { %1256 = vrot.lane.b32.xlu1 %v844_v19, %s1845_s20 }
 0x1e5   :  { %1260 = vrot.lane.b32.xlu1 %v846_v50, %s1845_s20 }
 0x228   :  { %v915_v53 = vpop.permute.xlu0 %914 }
 0x22b   :  { %v1689_v54 = vpop.permute.xlu1 %1688 }
 0x22c   :  { %v1691_v14 = vunpack.i.h.bf16 %v1689_v54  ;;  %v1690_v59 = vunpack.i.l.bf16 %v1689_v54  ;;  %v919_v60 = vpop.permute.xlu0 %918 }
 0x22e   :  { %v908_v63 = vsel %vm2792_vm3, %v1690_v59, %v1691_v14  ;;  %vm2797_vm3 = vcmp.lt.s32.totalorder %v1999_v20, 127 }
 0x22f   :  { %v1567_v9 = vpack.c.bf16 %v844_v19, %v908_v63  ;;  %v1694_v15 = vpop.permute.xlu1 %1693  ;;  %vm2803_vm11 = vmmov %vm2797_vm3 }
 0x230   :  { %v1696_v18 = vunpack.i.h.bf16 %v1694_v15  ;;  %v1695_v30 = vunpack.i.l.bf16 %v1694_v15  ;;  %v2477_v31 = vpop.permute.xlu0 %880 }
 0x231   :  { %1569 = vmatprep.subr.msk.bf16.mxu0 %vm2793_vm9, %v1567_v9  ;;  %vm2799_vm9 = vnez %v2698_v55 }
 0x232   :  { %v906_v35 = vsel %vm2794_vm6, %v1695_v30, %v1696_v18  ;;  %v907_v39 = vsel %vm2795_vm4, %v1691_v14, %v1695_v30  ;;  %v909_v40 = vsel %vm2796_vm15, %v1696_v18, %v1690_v59  ;;  %vm2800_vm6 = vnez %v2696_v49  ;;  %vm2802_vm15 = vmmov %vm2797_vm3 }
 0x233   :  { %v1570_v41 = vpack.c.bf16 %v843_v16, %v909_v40  ;;  %v1573_v24 = vpack.c.bf16 %v846_v50, %v906_v35  ;;  %v1576_v21 = vpack.c.bf16 %v845_v47, %v907_v39  ;;  %v917_v44 = vpop.permute.xlu1 %916  ;;  %vm2801_vm4 = vnez %v2700_v62  ;;  %v897_v16 = vld [vmem:[#allocation7 + $0x8] sm:$0xff] }
 0x234   :  { %v923_v45 = vsel %vm2797_vm3, %v917_v44, %v919_v60  ;;  %v885_v19 = vpop.permute.xlu0 %884  ;;  %v924_v47 = vsel %vm2802_vm15, %v915_v53, %v917_v44 }
 0x235   :  { %1572 = vmatpush1.bf16.msk.msra.mxu0 %vm2798_vm1, %v1570_v41  ;;  %1575 = vmatprep.subr.msk.bf16.mxu1 %vm2799_vm9, %v1573_v24  ;;  %vm2804_vm1 = vnez %v2706_v10  ;;  %vm2805_vm9 = vnez %v2702_v4 }
 0x236   :  { %1495 = vmatprep.subr.msk.mxu0 %vm2800_vm6, %v923_v45  ;;  %1578 = vmatpush1.bf16.msk.msra.mxu1 %vm2801_vm4, %v1576_v21  ;;  %vm2806_vm6 = vnez %v2708_v12  ;;  %vm2807_vm4 = vcmask 195584  }
 0x237   :  { %v921_v33 = vpop.permute.xlu1 %920  ;;  %vm2808_vm15 = vmmov %vm2807_vm4 }
 0x238   :  { %v922_v50 = vsel %vm2797_vm3, %v919_v60, %v921_v33  ;;  %v925_v48 = vsel %vm2803_vm11, %v921_v33, %v915_v53  ;;  %v1699_v22 = vpop.permute.xlu0 %1698  ;;  %vm2809_vm11 = vcmp.lt.s32.totalorder %v1999_v20, 17  ;;  %vm2810_vm3 = vcmp.lt.s32.totalorder %v1999_v20, 16 }
 0x239   :  { %1496 = vmatpush1.msk.msra.mxu0 %vm2804_vm1, %v924_v47  ;;  %1500 = vmatprep.subr.msk.mxu1 %vm2805_vm9, %v925_v48  ;;  %v1701_v49 = vunpack.i.h.bf16 %v1699_v22  ;;  %v1700_v55 = vunpack.i.l.bf16 %v1699_v22  ;;  %vm2811_vm1 = vmmov %vm2809_vm11 }
 0x23a   :  { %1501 = vmatpush1.msk.msra.mxu1 %vm2806_vm6, %v922_v50  ;;  %1497 = vmatmul.mubr.msk.f32.vlgmr.msra.gmra.mrb[2].mxu0 %vm2807_vm4, %v897_v16  ;;  %vm2812_vm9 = vmmov %vm2811_vm1 }
 0x23b   :  { %v1704_v62 = vpop.permute.xlu1 %1703  ;;  %1502 = vmatmul.mubr.msk.f32.vlgmr.msra.gmra.mrb[2].mxu1 %vm2808_vm15, %v897_v16  ;;  %1142 = vmatprep.mubr.f32.mxu0 %v1839_v11  ;;  %v858_v12 = vsel %vm2809_vm11, %v1700_v55, %v1701_v49  ;;  %vm2813_vm6 = vmmov %vm2811_vm1 }
 0x23c   :  { %v1709_v51 = vpop.permute.xlu0 %1708  ;;  %1213 = vmatprep.mubr.f32.mxu1 %v1839_v11  ;;  %v1706_v10 = vunpack.i.h.bf16 %v1704_v62  ;;  %v1705_v52 = vunpack.i.l.bf16 %v1704_v62  ;;  %vm2814_vm4 = vmmov %vm2810_vm3 }
 0x23d   :  { %v1711_v53 = vunpack.i.h.bf16 %v1709_v51  ;;  %v1710_v4 = vunpack.i.l.bf16 %v1709_v51  ;;  %vm2815_vm15 = vmmov %vm2810_vm3 }
 0x23e   :  { %v859_v9 = vsel %vm2811_vm1, %v1706_v10, %v1700_v55  ;;  %v856_v15 = vsel %vm2812_vm9, %v1705_v52, %v1706_v10  ;;  %v857_v18 = vsel %vm2813_vm6, %v1701_v49, %v1705_v52  ;;  %vm2816_vm11 = vmmov %vm2810_vm3  ;;  %vm2818_vm1 = vcmp.lt.s32.totalorder %v1999_v20, 15 }
 0x23f   :  { %v874_v54 = vsel %vm2810_vm3, %v1710_v4, %v1711_v53  ;;  %v1714_v14 = vpop.permute.xlu1 %1713  ;;  %vm2817_vm3 = vmpackc.low %vm2157_vm0, %vm2181_vm5  ;;  %vm2819_vm9 = vnez %v2722_v43  ;;  %vm2820_vm6 = vnez %v2724_v46  ;;  %vm2823_vm0 = vnez %v2716_v37 }
 0x240   :  { %v1579_v59 = vpack.c.bf16 %v874_v54, %v858_v12  ;;  %v1716_v60 = vunpack.i.h.bf16 %v1714_v14  ;;  %v1715_v63 = vunpack.i.l.bf16 %v1714_v14  ;;  %v1719_v21 = vpop.permute.xlu0 %1718 }
 0x241   :  { %v1720_v33 = vunpack.i.l.bf16 %v1719_v21 }
 0x242   :  { %v875_v30 = vsel %vm2814_vm4, %v1716_v60, %v1710_v4  ;;  %v872_v35 = vsel %vm2815_vm15, %v1715_v63, %v1716_v60  ;;  %v873_v39 = vsel %vm2816_vm11, %v1711_v53, %v1715_v63  ;;  %1581 = vmatprep.subr.msk.bf16.mxu0 %vm2817_vm3, %v1579_v59  ;;  %vm2821_vm4 = vmpackc.low %vm2819_vm9, %vm2820_vm6  ;;  %vm2822_vm15 = vnez %v2710_v17 }
 0x243   :  { %v1582_v40 = vpack.c.bf16 %v875_v30, %v859_v9  ;;  %v1585_v41 = vpack.c.bf16 %v872_v35, %v856_v15  ;;  %v1588_v24 = vpack.c.bf16 %v873_v39, %v857_v18  ;;  %v883_v44 = vpop.permute.xlu1 %882  ;;  %vm2824_vm5 = vmpackc.low %vm2822_vm15, %vm2823_vm0  ;;  %vm2825_vm11 = vnez %v2737_v25 }
 0x244   :  { %v890_v45 = vsel %vm2818_vm1, %v2477_v31, %v883_v44  ;;  %vm2826_vm3 = vnez %v2714_v29  ;;  %vm2829_vm9 = vcmp.lt.s32.totalorder %v1999_v20, 15  ;;  %v1729_v46 = vpop.permute.xlu0 %1728  ;;  %vm2832_vm15 = vnez %v2744_v36 }
 0x245   :  { %1584 = vmatpush1.bf16.msk.msra.mxu0 %vm2821_vm4, %v1582_v40  ;;  %1587 = vmatprep.subr.msk.bf16.mxu1 %vm2824_vm5, %v1585_v41  ;;  %vm2828_vm1 = vmpackc.low %vm2826_vm3, %vm2827_vm7  ;;  %vm2833_vm0 = vnez %v2742_v34  ;;  %vm2834_vm7 = vnez %v2746_v38  ;;  %vm2835_vm5 = vcmask 195584   ;;  %v1731_v32 = vunpack.i.h.bf16 %v1729_v46 }
 0x246   :  { %1507 = vmatprep.subr.msk.mxu0 %vm2825_vm11, %v890_v45  ;;  %1590 = vmatpush1.bf16.msk.msra.mxu1 %vm2828_vm1, %v1588_v24  ;;  %vm2830_vm6 = vmmov %vm2829_vm9  ;;  %v1730_v25 = vunpack.i.l.bf16 %v1729_v46  ;;  %vm2837_vm3 = vcmp.lt.s32.totalorder %v1999_v20, 112  ;;  %vm2838_vm1 = vcmp.lt.s32.totalorder %v1999_v20, 113 }
 0x247   :  { %v887_v28 = vpop.permute.xlu1 %886  ;;  %vm2831_vm4 = vmmov %vm2830_vm6 }
 0x248   :  { %v888_v43 = vsel %vm2829_vm9, %v885_v19, %v887_v28  ;;  %v891_v17 = vsel %vm2830_vm6, %v887_v28, %v2477_v31  ;;  %v889_v37 = vsel %vm2831_vm4, %v883_v44, %v885_v19  ;;  %vm2836_vm11 = vmmov %vm2835_vm5  ;;  %v1721_v19 = vunpack.i.h.bf16 %v1719_v21  ;;  %v1255_v34 = vpop.permute.xlu0 %1254 }
 0x249   :  { %1508 = vmatpush1.msk.msra.mxu0 %vm2832_vm15, %v891_v17  ;;  %1514 = vmatprep.subr.msk.mxu1 %vm2833_vm0, %v888_v43  ;;  %v1248_v50 = vsel %vm2837_vm3, %v1730_v25, %v1731_v32  ;;  %vm2839_vm9 = vmmov %vm2838_vm1 }
 0x24a   :  { %1515 = vmatpush1.msk.msra.mxu1 %vm2834_vm7, %v889_v37  ;;  %1509 = vmatmul.mubr.msk.f32.vlgmr.msra.gmra.mrb[2].mxu0 %vm2835_vm5, %v847_v42  ;;  %vm2840_vm6 = vmmov %vm2838_vm1 }
 0x24b   :  { %v1724_v29 = vpop.permute.xlu1 %1723  ;;  %1516 = vmatmul.mubr.msk.f32.vlgmr.msra.gmra.mrb[2].mxu1 %vm2836_vm11, %v847_v42  ;;  %1337 = vmatprep.mubr.f32.mxu0 %v1839_v11  ;;  %vm2841_vm4 = vmmov %vm2837_vm3 }
 0x24c   :  { %1408 = vmatprep.mubr.f32.mxu1 %v1839_v11  ;;  %v1726_v31 = vunpack.i.h.bf16 %v1724_v29  ;;  %v1725_v36 = vunpack.i.l.bf16 %v1724_v29  ;;  %vm2842_vm15 = vmmov %vm2837_vm3  ;;  %v1259_v54 = vpop.permute.xlu0 %1258 }
 0x24d   :  { %vm2843_vm0 = vmmov %vm2837_vm3  ;;  %vm2847_vm3 = vcmp.lt.s32.totalorder %v1999_v20, 111 }
 0x24e   :  { %v1233_v48 = vsel %vm2838_vm1, %v1726_v31, %v1720_v33  ;;  %v1230_v22 = vsel %vm2839_vm9, %v1725_v36, %v1726_v31  ;;  %v1231_v11 = vsel %vm2840_vm6, %v1721_v19, %v1725_v36  ;;  %vm2844_vm7 = vmmov %vm2838_vm1  ;;  %vm2849_vm9 = vnez %v2768_v27 }
 0x24f   :  { %v1734_v16 = vpop.permute.xlu1 %1733  ;;  %v1232_v51 = vsel %vm2844_vm7, %v1720_v33, %v1721_v19  ;;  %vm2845_vm5 = vmpackc.low %vm2323_vm2, %vm2319_vm10  ;;  %vm2850_vm10 = vnez %v2766_v26  ;;  %vm2852_vm6 = vnez %v2782_v61 }
 0x250   :  { %v1736_v47 = vunpack.i.h.bf16 %v1734_v16  ;;  %v1735_v38 = vunpack.i.l.bf16 %v1734_v16  ;;  %v1594_v12 = vpack.c.bf16 %v1248_v50, %v1232_v51  ;;  %vm2846_vm11 = vmpackc.low %vm2334_vm12, %vm2327_vm14 }
 0x251   :  { %vm2848_vm1 = vmpackc.low %vm2342_vm13, %vm2338_vm8  ;;  %vm2856_vm8 = vnez %v2778_v23 }
 0x252   :  { %v1249_v49 = vsel %vm2841_vm4, %v1736_v47, %v1730_v25  ;;  %v1246_v55 = vsel %vm2842_vm15, %v1735_v38, %v1736_v47  ;;  %v1247_v62 = vsel %vm2843_vm0, %v1731_v32, %v1735_v38  ;;  %vm2851_vm2 = vmpackc.low %vm2849_vm9, %vm2850_vm10  ;;  %vm2857_vm4 = vnez %v2784_v5 }
 0x253   :  { %v1591_v10 = vpack.c.bf16 %v1247_v62, %v1231_v11  ;;  %v1597_v52 = vpack.c.bf16 %v1249_v49, %v1233_v48  ;;  %v1600_v53 = vpack.c.bf16 %v1246_v55, %v1230_v22  ;;  %v1257_v4 = vpop.permute.xlu1 %1256  ;;  %vm2853_vm14 = vmmov %vm2847_vm3  ;;  %vm2858_vm15 = vnez %v2786_v8 }
 0x254   :  { %v1263_v14 = vsel %vm2847_vm3, %v1257_v4, %v1259_v54  ;;  %vm2854_vm12 = vmmov %vm2847_vm3  ;;  %vm2859_vm0 = vcmask 195584  }
 0x255   :  { %1593 = vmatprep.subr.msk.bf16.mxu0 %vm2845_vm5, %v1591_v10  ;;  %1599 = vmatprep.subr.msk.bf16.mxu1 %vm2846_vm11, %v1597_v52  ;;  %vm2855_vm13 = vmmov %vm2847_vm3 }
 0x256   :  { %1596 = vmatpush1.bf16.msk.msra.mxu0 %vm2848_vm1, %v1594_v12  ;;  %1602 = vmatpush1.bf16.msk.msra.mxu1 %vm2851_vm2, %v1600_v53  ;;  %v1264_v13 = vsel %vm2855_vm13, %v1255_v34, %v1257_v4  ;;  %vm2860_vm7 = vmmov %vm2859_vm0 }
 0x257   :  { %v1261_v56 = vpop.permute.xlu1 %1260  ;;  %1521 = vmatprep.subr.msk.mxu0 %vm2852_vm6, %v1263_v14 }
 0x258   :  { %v1262_v57 = vsel %vm2853_vm14, %v1259_v54, %v1261_v56  ;;  %v1265_v58 = vsel %vm2854_vm12, %v1261_v56, %v1255_v34 }
 0x259   :  { %1528 = vmatprep.subr.msk.mxu1 %vm2856_vm8, %v1265_v58 }
 0x25a   :  { %1522 = vmatpush1.msk.msra.mxu0 %vm2857_vm4, %v1264_v13  ;;  %1529 = vmatpush1.msk.msra.mxu1 %vm2858_vm15, %v1262_v57 }
 0x25b   :  { %1523 = vmatmul.mubr.msk.f32.vlgmr.msra.gmra.mrb[2].mxu0 %vm2859_vm0, %v1221_v7  ;;  %1530 = vmatmul.mubr.msk.f32.vlgmr.msra.gmra.mrb[2].mxu1 %vm2860_vm7, %v1221_v7 }
 0x25d   :  { %v1423_v0 = vpop.permute.xlu0 %1422 }
 0x32e   :  { %v1339_v26 = vpop.f32.mrb[2].mxu0  ;;  %v1410_v27 = vpop.f32.mrb[2].mxu1 }
 0x32f   :  { %v1425_v61 = vadd.f32 %v1423_v0, %v1339_v26  ;;  %v1427_v59 = vadd.f32 %v1423_v0, %v1410_v27  ;;  %v1341_v20 = vpop.f32.mrb[3].mxu0  ;;  %v1412_v60 = vpop.f32.mrb[3].mxu1 }
 0x330   :  { %v1426_v23 = vadd.f32 %v1423_v0, %v1341_v20  ;;  %v1428_v63 = vadd.f32 %v1423_v0, %v1412_v60 }
 0x331   :  { %v1429_v5 = vadd.f32 %v1425_v61, %v1925_v1  ;;  %v1431_v8 = vadd.f32 %v1427_v59, %v1929_v3 }
 0x332   :  { %v1430_v9 = vadd.f32 %v1426_v23, %v1927_v2  ;;  %v1432_v15 = vadd.f32 %v1428_v63, %v1937_v6 }
 0x333   :  { %1433 = vst [vmem:[#allocation8] sm:$0xff] %v1429_v5  ;;  %1435 = vst [vmem:[#allocation8 + $0x10] sm:$0xff] %v1431_v8 }
 0x334   :  { %1434 = vst [vmem:[#allocation8 + $0x8] sm:$0xff] %v1430_v9  ;;  %1436 = vst [vmem:[#allocation8 + $0x18] sm:$0xff] %v1432_v15 }
 0x335   :  { %1814 = shalt.err (!%p1811_p0)
}
 0x336   :  { %s1815_s11 = scalar_lea.hbm %s2648_s7, 512 }
 0x337   :  { %p1816_p1 = scmp.ne.s32.totalorder %s2648_s7, %s1815_s11  ;;  %p1819_p2 = scmp.lt.u32.totalorder %s1815_s11, %s2648_s7 }
 0x339   :  { %p1821_p3 = pnand %p1819_p2, %p1816_p1 }
 0x33b   :  { %1824 = shalt.err (!%p1821_p3)
}
 0x33c   :  { %1446 = dma.vmem_to_hbm [thread:$0]  %s1444_s30, 512, %s2648_s7, [#allocation4]  }
 0x33d   :  { %1829 = dma.done.wait [#allocation4], 512  }
 0x33e   :  { %1830 = vsyncadd [#allocation4], 4294966784 }
 0x33f   :  { %1450 = vsyncpa [#allocation3], 1 }
 0x340   :  { %1451 = vsyncpa [#allocation6], 1 }
 0x341   :  { %1452 = vsyncpa [#allocation4], 1 }

</bundles_post_ra>
